<compile_context>
chip_gen: v6e
topology: v6e:2x2x1
jax: 0.10.0
libtpu: 0.0.40
codegen_flags: <defaults>
</compile_context>

<pallas_src>
import functools

import jax
import jax.numpy as jnp
from jax.experimental import pallas as pl
from jax.experimental.pallas import tpu as pltpu

LANE = 128      # TPU lane width: keep last dims lane-dense (unmasked vst/vld).
SUBLANE = 8     # f32 sublane width for the second-to-last dim.


def _round_up(n: int, m: int) -> int:
    return ((n + m - 1) // m) * m


def linear_head_kernel(x_ref, w_ref, b_ref, o_ref):
    """One batch-tile of y = x @ W + b.

    x_ref: [TM, DIN_P]    compute dtype (bf16) batch tile
    w_ref: [DIN_P, DOUT_P] compute dtype, resident across the grid
    b_ref: [1, DOUT_P]    f32, resident across the grid
    o_ref: [TM, DOUT_P]   f32, lane-dense (multiple of 128 lanes)
    """
    acc = jnp.dot(x_ref[...], w_ref[...], preferred_element_type=jnp.float32)
    # Epilogue (bias add + cast) stays in f32 on the VPU.
    o_ref[...] = (acc + b_ref[...]).astype(o_ref.dtype)


@functools.partial(jax.jit, static_argnames=("tm", "use_bf16"))
def base_head_forward(x, w, b, *, tm: int = 256, use_bf16: bool = True):
    """Affine head y = x @ W + b as a lane-dense, batch-tiled Pallas kernel."""
    batch, input_dim = x.shape
    din_w, output_dim = w.shape
    assert din_w == input_dim, "weight/input dim mismatch"

    # Pad feature dims to 128-lane multiples (zero padding -> exact result).
    din_p = _round_up(input_dim, LANE)
    dout_p = _round_up(output_dim, LANE)

    # Batch tile: at most `tm` rows, at least a sublane multiple.  Double-
    # buffered x/out tiles of a few hundred KiB stay far under 32 MiB scoped
    # VMEM on every generation (v5e/v6e/v7x).
    tm_eff = min(tm, _round_up(batch, SUBLANE))
    batch_p = _round_up(batch, tm_eff)

    compute_dtype = jnp.bfloat16 if use_bf16 else x.dtype

    x_p = jnp.zeros((batch_p, din_p), compute_dtype)
    x_p = x_p.at[:batch, :input_dim].set(x.astype(compute_dtype))
    w_p = jnp.zeros((din_p, dout_p), compute_dtype)
    w_p = w_p.at[:input_dim, :output_dim].set(w.astype(compute_dtype))
    b_p = jnp.zeros((1, dout_p), jnp.float32)
    b_p = b_p.at[0, :output_dim].set(b.astype(jnp.float32))

    grid = (batch_p // tm_eff,)

    flops = 2 * batch_p * din_p * dout_p
    bytes_accessed = (
        x_p.size * x_p.dtype.itemsize
        + w_p.size * w_p.dtype.itemsize
        + b_p.size * b_p.dtype.itemsize
        + batch_p * dout_p * 4
    )

    y_p = pl.pallas_call(
        linear_head_kernel,
        out_shape=jax.ShapeDtypeStruct((batch_p, dout_p), jnp.float32),
        grid=grid,
        in_specs=[
            pl.BlockSpec((tm_eff, din_p), lambda i: (i, 0)),   # x batch tile
            pl.BlockSpec((din_p, dout_p), lambda i: (0, 0)),   # W: resident
            pl.BlockSpec((1, dout_p), lambda i: (0, 0)),       # b: resident
        ],
        out_specs=pl.BlockSpec((tm_eff, dout_p), lambda i: (i, 0)),
        compiler_params=pltpu.CompilerParams(
            dimension_semantics=("parallel",),   # megacore split on v7x
        ),
        cost_estimate=pl.CostEstimate(
            flops=flops, transcendentals=0, bytes_accessed=bytes_accessed),
    )(x_p, w_p, b_p)

    # Slice the lane padding / batch padding back off outside the kernel.
    return y_p[:batch, :output_dim]


if __name__ == "__main__":
    # Small, module-consistent shapes: state vector of input_dim per batch row,
    # output_dim = number of assets.
    batch = 8
    input_dim = 32
    output_dim = 16

    key = jax.random.PRNGKey(0)
    kx, kw, kb = jax.random.split(key, 3)

    x = jax.random.normal(kx, (batch, input_dim), dtype=jnp.float32)
    # Deterministic parameter init (synthetic, not a checkpoint load).
    w = jax.random.normal(kw, (input_dim, output_dim), dtype=jnp.float32) * (
        1.0 / jnp.sqrt(input_dim)
    )
    b = jax.random.normal(kb, (output_dim,), dtype=jnp.float32) * 0.01

    y = jax.block_until_ready(base_head_forward(x, w, b))

    # Matching-precision reference (bf16 MXU operands, f32 accumulate).
    y_ref_bf16 = (
        jnp.dot(x.astype(jnp.bfloat16), w.astype(jnp.bfloat16),
                preferred_element_type=jnp.float32)
        + b[None, :]
    )
    # Full-f32 reference (loose tolerance covers bf16 operand rounding).
    y_ref_f32 = x @ w + b[None, :]

    assert y.shape == (batch, output_dim)
    assert jnp.allclose(y, y_ref_bf16, atol=1e-4, rtol=1e-4)
    assert jnp.allclose(y, y_ref_f32, atol=5e-2, rtol=5e-2)

    print("KERNEL_OK")
</pallas_src>

<mosaic_0001>
module attributes {stable_mosaic.version = 11 : i64} {
  func.func @linear_head_kernel(%arg0: i32, %arg1: memref<8x128xbf16, #tpu.memory_space<vmem>>, %arg2: memref<128x128xbf16, #tpu.memory_space<vmem>>, %arg3: memref<1x128xf32, #tpu.memory_space<vmem>>, %arg4: memref<8x128xf32, #tpu.memory_space<vmem>>) attributes {dimension_semantics = [#tpu.dimension_semantics<parallel>], iteration_bounds = array<i64: 1>, scalar_prefetch = 0 : i64, scratch_operands = 0 : i64, tpu.core_type = #tpu.core_type<tc>, window_params = [{transform_indices = @transform_0, window_bounds = array<i64: 8, 128>}, {pipeline_mode = #tpu.pipeline_mode<synchronous>, transform_indices = @transform_1, window_bounds = array<i64: 128, 128>}, {pipeline_mode = #tpu.pipeline_mode<synchronous>, transform_indices = @transform_2, window_bounds = array<i64: 1, 128>}, {transform_indices = @transform_3, window_bounds = array<i64: 8, 128>}]} {
    %c0 = arith.constant 0 : index
    %c0_0 = arith.constant 0 : index
    %0 = vector.load %arg1[%c0, %c0_0] : memref<8x128xbf16, #tpu.memory_space<vmem>>, vector<8x128xbf16>
    %c0_1 = arith.constant 0 : index
    %c0_2 = arith.constant 0 : index
    %1 = vector.load %arg2[%c0_1, %c0_2] : memref<128x128xbf16, #tpu.memory_space<vmem>>, vector<128x128xbf16>
    %cst = arith.constant dense<0.000000e+00> : vector<8x128xf32>
    %2 = tpu.matmul %0, %1, %cst {dimension_numbers = #tpu.dot_dimension_numbers<[1], [0], [0], [1], [0, 0, 1, 1], [], []>} : vector<8x128xbf16>, vector<128x128xbf16>, vector<8x128xf32> -> vector<8x128xf32>
    %c0_3 = arith.constant 0 : index
    %c0_4 = arith.constant 0 : index
    %3 = vector.load %arg3[%c0_3, %c0_4] : memref<1x128xf32, #tpu.memory_space<vmem>>, vector<1x128xf32>
    %4 = vector.broadcast %3 : vector<1x128xf32> to vector<8x128xf32>
    %5 = arith.addf %2, %4 : vector<8x128xf32>
    %c0_5 = arith.constant 0 : index
    %c0_6 = arith.constant 0 : index
    %6 = vector.load %arg4[%c0_5, %c0_6] : memref<8x128xf32, #tpu.memory_space<vmem>>, vector<8x128xf32>
    tpu.vector_store %arg4[%c0_5, %c0_6], %5 {strides = array<i32>} : memref<8x128xf32, #tpu.memory_space<vmem>>, vector<8x128xf32>,
    return
  }
  func.func @transform_0(%arg0: i32) -> (i32, i32) {
    %c0_i32 = arith.constant 0 : i32
    %c0_i32_0 = arith.constant 0 : i32
    return %arg0, %c0_i32 : i32, i32
  }
  func.func @transform_1(%arg0: i32) -> (i32, i32) {
    %c0_i32 = arith.constant 0 : i32
    %c0_i32_0 = arith.constant 0 : i32
    %c0_i32_1 = arith.constant 0 : i32
    return %c0_i32, %c0_i32_0 : i32, i32
  }
  func.func @transform_2(%arg0: i32) -> (i32, i32) {
    %c0_i32 = arith.constant 0 : i32
    %c0_i32_0 = arith.constant 0 : i32
    %c0_i32_1 = arith.constant 0 : i32
    return %c0_i32, %c0_i32_0 : i32, i32
  }
  func.func @transform_3(%arg0: i32) -> (i32, i32) {
    %c0_i32 = arith.constant 0 : i32
    %c0_i32_0 = arith.constant 0 : i32
    return %arg0, %c0_i32 : i32, i32
  }
}

</mosaic_0001>

<bundles_post_ra>
// kernel: base_head_forward.1
= control target key start
LH: loop header
LB: loop body
LE: loop exit
PB: predicated region body
PF: predicated region fallthrough
CT: control target
= control target key end

     0   :  { %v214_v1 = vmov 0.0   ;;  %vm215_vm0 = vmmov 0   ;;  %s270_s0 = inlined_call_operand.vmem [shape: bf16[8,128], index: 0, kind: input, shape index: {}]   ;;  %s271_s1 = inlined_call_operand.vmem [shape: bf16[128,128], index: 1, kind: input, shape index: {}]   ;;  %s272_s2 = inlined_call_operand.vmem [shape: f32[1,128], index: 2, kind: input, shape index: {}]   ;;  %s273_s3 = inlined_call_operand.hbm [shape: f32[8,128], index: 3, kind: output, shape index: {}]  }
   0x1   :  { %v184_v0 = vld [vmem:[%s271_s1 + $0x38] sm:$0xff]   ;;  %161 = vmatprep.subr.bf16.mxu0 %v214_v1  ;;  %v185_v2 = vld [vmem:[%s271_s1 + $0x30] sm:$0xff]   ;;  %177 = vmatprep.mubr.msk.bf16.mxu0 %vm215_vm0, %v214_v1  ;;  %v186_v3 = vld [vmem:[%s271_s1 + $0x28] sm:$0xff]  }
   0x2   :  { %162 = vmatpush3.bf16.msra.mxu0 %v184_v0 }
   0x3   :  { %163 = vmatprep.subr.bf16.mxu0 %v214_v1 }
   0x6   :  { %164 = vmatpush3.bf16.msra.mxu0 %v185_v2 }
   0x7   :  { %165 = vmatprep.subr.bf16.mxu0 %v214_v1 }
   0x8   :  { %8 = vsyncpa [#allocation3], 0  ;;  %v187_v4 = vld [vmem:[%s271_s1 + $0x20] sm:$0xff]   ;;  %v188_v5 = vld [vmem:[%s271_s1 + $0x18] sm:$0xff]   ;;  %s216_s5 = smov [#allocation2]  }
   0x9   :  { %v189_v6 = vld [vmem:[%s271_s1 + $0x10] sm:$0xff]   ;;  %v190_v7 = vld [vmem:[%s271_s1 + $0x8] sm:$0xff]   ;;  %v191_v8 = vld [vmem:[%s271_s1] sm:$0xff]   ;;  %s135_s6 = sshll.u32 %s216_s5, 4  ;;  %s136_s6 = int_to_ptr.vmem [resolvable:$true] %s135_s6 }
   0xa   :  { %166 = vmatpush3.bf16.msra.mxu0 %v186_v3  ;;  %v16_v9 = vld [vmem:[%s270_s0] sm:$0xf]  ;;  %s192_s1 = scalar_lea.vmem %s136_s6, 128  ;;  %p197_p1 = scmp.lt.s32.totalorder %s136_s6, %s136_s6 }
   0xb   :  { %167 = vmatprep.subr.bf16.mxu0 %v214_v1  ;;  %v143_v10 = vld [vmem:[%s272_s2] ss:$0 sm:$0xff]  ;;  %p193_p0 = scmp.ne.s32.totalorder %s136_s6, %s192_s1  ;;  %p198_p2 = scmp.lt.s32.totalorder %s192_s1, %s192_s1 }
   0xd   :  { %p199_p3 = por %p198_p2, %p197_p1 }
   0xe   :  { %168 = vmatpush3.bf16.msra.mxu0 %v187_v4 }
   0xf   :  { %169 = vmatprep.subr.bf16.mxu0 %v214_v1  ;;  %p200_p4 = pnand %p199_p3, %p193_p0 }
  0x12   :  { %170 = vmatpush3.bf16.msra.mxu0 %v188_v5 }
  0x13   :  { %171 = vmatprep.subr.bf16.mxu0 %v214_v1 }
  0x16   :  { %172 = vmatpush3.bf16.msra.mxu0 %v189_v6 }
  0x17   :  { %173 = vmatprep.subr.bf16.mxu0 %v214_v1 }
  0x1a   :  { %174 = vmatpush3.bf16.msra.mxu0 %v190_v7 }
  0x1b   :  { %175 = vmatprep.subr.bf16.mxu0 %v214_v1 }
  0x1e   :  { %176 = vmatpush3.bf16.msra.mxu0 %v191_v8 }
  0x21   :  { %178 = vmatmul.mubr.bf16.vlgmr.msra.gmra.mxu0 %v16_v9 }
  0xe1   :  { %v122_v11 = vpop.f32.mrf.mxu0 }
  0xe2   :  { %v123_v12 = vadd.f32 %v143_v10, %v122_v11 }
  0xe3   :  { %v179_v13 = vpop.f32.mrf.mxu0 }
  0xe4   :  { %128 = vst [vmem:[#allocation2] sm:$0xff] %v123_v12 }
  0xe5   :  { %v125_v14 = vpop.f32.mrf.mxu0 }
  0xe6   :  { %203 = shalt.err (!%p200_p4)
}
  0xe7   :  { %138 = dma.vmem_to_hbm [thread:$0]  %s136_s6, 128, %s273_s3, [#allocation3]   ;;  %v180_v15 = vpop.f32.mrf.mxu0 }
  0xe8   :  { %212 = dma.done.wait [#allocation3], 128  }
  0xe9   :  { %213 = vsyncadd [#allocation3], 4294967168 }
  0xea   :  { %142 = vsyncpa [#allocation3], 1 }

</bundles_post_ra>
